<compile_context>
chip_gen: v5e
topology: v5e:2x2
jax: 0.10.0
libtpu: 0.0.40
codegen_flags: <defaults>
</compile_context>

<pallas_src>
import functools

import jax
import jax.numpy as jnp
from jax.experimental import pallas as pl
from jax.experimental.pallas import tpu as pltpu

_OUT_LANES = 128  # lane-dense per-tile partial-sum row width


def _ce_label_smooth_kernel(logits_ref, targets_ref, partial_ref, *,
                            epsilon, n_total, tile_n):
    """One batch tile -> one (1, 128) lane-dense partial-sum row (lane 0)."""
    i = pl.program_id(0)

    x = logits_ref[...].astype(jnp.float32)                # (TILE_N, C)
    t = targets_ref[...]                                   # (TILE_N, 1) int32
    tn, c = x.shape
    one_minus_eps = 1.0 - epsilon
    eps_over_c = epsilon / float(c)

    # Numerically stable log-softmax pieces along the class (lane) axis.
    m = jnp.max(x, axis=-1, keepdims=True)                 # (TILE_N, 1)
    shifted = x - m                                        # (TILE_N, C)
    lse = jnp.log(jnp.sum(jnp.exp(shifted), axis=-1, keepdims=True))  # (TILE_N, 1)

    # Gather shifted[i, t_i] without a one-hot: compare a (1, C) class-id row
    # (broadcast along sublanes) against the targets column.
    # NOTE: targets are assumed in [0, C); out-of-range targets silently drop
    # the (1-eps) term (PyTorch's scatter_ would raise).
    class_ids = jax.lax.broadcasted_iota(jnp.int32, (1, c), 1)
    tgt_shifted = jnp.sum(jnp.where(class_ids == t, shifted, 0.0),
                          axis=-1, keepdims=True)           # (TILE_N, 1)
    row_sum_shifted = jnp.sum(shifted, axis=-1, keepdims=True)

    #   -(1-eps)*(tgt - lse) - (eps/C)*(rowsum - C*lse)
    # == lse - (1-eps)*tgt - (eps/C)*rowsum
    loss_i = lse - one_minus_eps * tgt_shifted - eps_over_c * row_sum_shifted

    # Ragged tail: rows past the true batch were read as garbage; zero them
    # with a pure select BEFORE any reduction (garbage never enters arithmetic
    # that survives).
    row_ids = i * tile_n + jax.lax.broadcasted_iota(jnp.int32, (tn, 1), 0)
    tile_sum = jnp.sum(jnp.where(row_ids < n_total, loss_i, 0.0))

    # Lane-dense output: partial sum in lane 0, zeros elsewhere.
    lane_ids = jax.lax.broadcasted_iota(jnp.int32, (1, _OUT_LANES), 1)
    partial_ref[...] = jnp.where(lane_ids == 0, tile_sum, 0.0)


def _is_v7x():
    try:
        kind = jax.devices()[0].device_kind.lower()
    except Exception:
        return False
    return ("v7" in kind) or ("7x" in kind)


def cross_entropy_label_smooth(logits, targets, *, num_classes, epsilon,
                               tile_n=None):
    """logits: (N, C) float (f32 or bf16); targets: (N,) int. Returns scalar f32."""
    n, c = logits.shape
    assert c == num_classes

    v7x = _is_v7x()
    if v7x:
        # 64 MiB VMEM/TC: smaller blocks; keep >= 2 tiles for both TensorCores.
        target_block_bytes = 3 * 1024 * 1024 + 512 * 1024   # ~3.5 MiB
        vmem_limit = 48 * 1024 * 1024
    else:
        # v5e / v6e: 128 MiB VMEM, HBM-bound -> big streaming blocks.
        target_block_bytes = 6 * 1024 * 1024
        vmem_limit = 64 * 1024 * 1024

    itemsize = jnp.dtype(logits.dtype).itemsize
    row_bytes = max(c * itemsize, 1)

    if tile_n is None:
        tile_n = max(8, (target_block_bytes // row_bytes) // 8 * 8)
        # Never blow a small batch up to a huge (mostly-masked) tile.
        n_r8 = ((n + 7) // 8) * 8
        tile_n = min(tile_n, n_r8)
        if v7x:
            # Ensure >= 2 tiles so the "parallel" axis shards across both TCs.
            half = ((pl.cdiv(n, 2) + 7) // 8) * 8
            tile_n = min(tile_n, max(8, half))
        tile_n = max(8, tile_n)
    tile_n = int(tile_n)

    num_tiles = int(pl.cdiv(n, tile_n))
    targets_2d = targets.reshape(n, 1).astype(jnp.int32)

    kernel = functools.partial(
        _ce_label_smooth_kernel,
        epsilon=float(epsilon),
        n_total=int(n),
        tile_n=tile_n,
    )

    cost = pl.CostEstimate(
        flops=8 * n * c,
        transcendentals=n * c + n,
        bytes_accessed=n * c * itemsize + n * 4 + num_tiles * _OUT_LANES * 4,
    )

    partials = pl.pallas_call(
        kernel,
        out_shape=jax.ShapeDtypeStruct((num_tiles, _OUT_LANES), jnp.float32),
        grid=(num_tiles,),
        in_specs=[
            pl.BlockSpec((tile_n, c), lambda i: (i, 0)),   # logits tile
            pl.BlockSpec((tile_n, 1), lambda i: (i, 0)),   # targets tile
        ],
        out_specs=pl.BlockSpec((1, _OUT_LANES), lambda i: (i, 0)),
        compiler_params=pltpu.CompilerParams(
            dimension_semantics=("parallel",),             # megacore-shardable
            vmem_limit_bytes=vmem_limit,
        ),
        cost_estimate=cost,
    )(logits, targets_2d)

    # mean over batch (global N), sum over classes == total / N.
    return jnp.sum(partials) / jnp.float32(n)


def _reference(logits, targets, num_classes, epsilon):
    log_probs = jax.nn.log_softmax(logits.astype(jnp.float32), axis=1)
    one_hot = jax.nn.one_hot(targets, num_classes, dtype=jnp.float32)
    t = (1.0 - epsilon) * one_hot + epsilon / num_classes
    return (-t * log_probs).mean(0).sum()


if __name__ == "__main__":
    num_classes = 32
    epsilon = 0.1
    batch = 8

    key = jax.random.PRNGKey(0)
    k_logits, k_targets = jax.random.split(key)
    logits = jax.random.normal(k_logits, (batch, num_classes), dtype=jnp.float32)
    targets = jax.random.randint(k_targets, (batch,), 0, num_classes,
                                 dtype=jnp.int32)

    loss = cross_entropy_label_smooth(
        logits, targets, num_classes=num_classes, epsilon=epsilon)
    jax.block_until_ready(loss)
    ref = _reference(logits, targets, num_classes, epsilon)
    assert jnp.allclose(loss, ref, atol=1e-5, rtol=1e-5), (loss, ref)

    # Ragged batch, multiple tiles, NO wrapper-side padding of logits.
    batch2 = 13
    logits2 = jax.random.normal(jax.random.PRNGKey(1), (batch2, num_classes),
                                dtype=jnp.float32)
    targets2 = jax.random.randint(jax.random.PRNGKey(2), (batch2,), 0,
                                  num_classes, dtype=jnp.int32)
    loss2 = cross_entropy_label_smooth(
        logits2, targets2, num_classes=num_classes, epsilon=epsilon, tile_n=8)
    jax.block_until_ready(loss2)
    ref2 = _reference(logits2, targets2, num_classes, epsilon)
    assert jnp.allclose(loss2, ref2, atol=1e-5, rtol=1e-5), (loss2, ref2)

    # bf16 logits accepted at the boundary (in-kernel math still f32).
    logits_bf16 = logits.astype(jnp.bfloat16)
    loss3 = cross_entropy_label_smooth(
        logits_bf16, targets, num_classes=num_classes, epsilon=epsilon)
    jax.block_until_ready(loss3)
    ref3 = _reference(logits_bf16.astype(jnp.float32), targets, num_classes,
                      epsilon)
    assert jnp.allclose(loss3, ref3, atol=1e-4, rtol=1e-4), (loss3, ref3)

    print("KERNEL_OK")
</pallas_src>

<mosaic_0001>
module attributes {stable_mosaic.version = 11 : i64} {
  func.func @_ce_label_smooth_kernel(%arg0: i32, %arg1: memref<8x32xf32, #tpu.memory_space<vmem>>, %arg2: memref<8x1xi32, #tpu.memory_space<vmem>>, %arg3: memref<1x128xf32, #tpu.memory_space<vmem>>) attributes {dimension_semantics = [#tpu.dimension_semantics<parallel>], iteration_bounds = array<i64: 1>, scalar_prefetch = 0 : i64, scratch_operands = 0 : i64, tpu.core_type = #tpu.core_type<tc>, window_params = [{transform_indices = @transform_0, window_bounds = array<i64: 8, 32>}, {transform_indices = @transform_1, window_bounds = array<i64: 8, 1>}, {transform_indices = @transform_2, window_bounds = array<i64: 1, 128>}]} {
    %c0 = arith.constant 0 : index
    %c0_0 = arith.constant 0 : index
    %0 = vector.load %arg1[%c0, %c0_0] : memref<8x32xf32, #tpu.memory_space<vmem>>, vector<8x32xf32>
    %c0_1 = arith.constant 0 : index
    %c0_2 = arith.constant 0 : index
    %1 = vector.load %arg2[%c0_1, %c0_2] : memref<8x1xi32, #tpu.memory_space<vmem>>, vector<8x1xi32>
    %cst = arith.constant dense<0xFF800000> : vector<8xf32>
    %2 = vector.multi_reduction <maximumf>, %0, %cst [1] : vector<8x32xf32> to vector<8xf32>
    %3 = vector.shape_cast %2 : vector<8xf32> to vector<8x1xf32>
    %4 = vector.broadcast %3 : vector<8x1xf32> to vector<8x32xf32>
    %5 = arith.subf %0, %4 : vector<8x32xf32>
    %6 = math.exp %5 : vector<8x32xf32>
    %cst_3 = arith.constant dense<0.000000e+00> : vector<8xf32>
    %7 = vector.multi_reduction <add>, %6, %cst_3 [1] : vector<8x32xf32> to vector<8xf32>
    %8 = vector.shape_cast %7 : vector<8xf32> to vector<8x1xf32>
    %9 = math.log %8 : vector<8x1xf32>
    %10 = tpu.iota {dimensions = array<i32: 1>} : vector<1x32xi32>
    %11 = vector.broadcast %10 : vector<1x32xi32> to vector<8x32xi32>
    %12 = vector.broadcast %1 : vector<8x1xi32> to vector<8x32xi32>
    %13 = arith.cmpi eq, %11, %12 : vector<8x32xi32>
    %cst_4 = arith.constant 0.000000e+00 : f32
    %14 = vector.broadcast %cst_4 : f32 to vector<8x32xf32>
    %15 = arith.select %13, %5, %14 : vector<8x32xi1>, vector<8x32xf32>
    %cst_5 = arith.constant dense<0.000000e+00> : vector<8xf32>
    %16 = vector.multi_reduction <add>, %15, %cst_5 [1] : vector<8x32xf32> to vector<8xf32>
    %17 = vector.shape_cast %16 : vector<8xf32> to vector<8x1xf32>
    %cst_6 = arith.constant dense<0.000000e+00> : vector<8xf32>
    %18 = vector.multi_reduction <add>, %5, %cst_6 [1] : vector<8x32xf32> to vector<8xf32>
    %19 = vector.shape_cast %18 : vector<8xf32> to vector<8x1xf32>
    %cst_7 = arith.constant 0.899999976 : f32
    %20 = vector.broadcast %cst_7 : f32 to vector<8x1xf32>
    %21 = arith.mulf %20, %17 : vector<8x1xf32>
    %22 = arith.subf %9, %21 : vector<8x1xf32>
    %cst_8 = arith.constant 3.125000e-03 : f32
    %23 = vector.broadcast %cst_8 : f32 to vector<8x1xf32>
    %24 = arith.mulf %23, %19 : vector<8x1xf32>
    %25 = arith.subf %22, %24 : vector<8x1xf32>
    %c8_i32 = arith.constant 8 : i32
    %26 = arith.muli %arg0, %c8_i32 : i32
    %27 = tpu.iota {dimensions = array<i32: 0>} : vector<8x1xi32>
    %28 = vector.broadcast %26 : i32 to vector<8x1xi32>
    %29 = arith.addi %28, %27 : vector<8x1xi32>
    %c8_i32_9 = arith.constant 8 : i32
    %30 = vector.broadcast %c8_i32_9 : i32 to vector<8x1xi32>
    %31 = arith.cmpi slt, %29, %30 : vector<8x1xi32>
    %cst_10 = arith.constant 0.000000e+00 : f32
    %32 = vector.broadcast %cst_10 : f32 to vector<8x1xf32>
    %33 = arith.select %31, %25, %32 : vector<8x1xi1>, vector<8x1xf32>
    %34 = vector.shape_cast %33 : vector<8x1xf32> to vector<1x8x1xf32>
    %cst_11 = arith.constant dense<0.000000e+00> : vector<1xf32>
    %35 = vector.multi_reduction <add>, %34, %cst_11 [1, 2] : vector<1x8x1xf32> to vector<1xf32>
    %36 = vector.shape_cast %35 : vector<1xf32> to vector<1x1x1xf32>
    %37 = vector.extract %36[0, 0, 0] : f32 from vector<1x1x1xf32>
    %38 = tpu.iota {dimensions = array<i32: 1>} : vector<1x128xi32>
    %c0_i32 = arith.constant 0 : i32
    %39 = vector.broadcast %c0_i32 : i32 to vector<1x128xi32>
    %40 = arith.cmpi eq, %38, %39 : vector<1x128xi32>
    %cst_12 = arith.constant 0.000000e+00 : f32
    %41 = vector.broadcast %37 : f32 to vector<1x128xf32>
    %42 = vector.broadcast %cst_12 : f32 to vector<1x128xf32>
    %43 = arith.select %40, %41, %42 : vector<1x128xi1>, vector<1x128xf32>
    %c0_13 = arith.constant 0 : index
    %c0_14 = arith.constant 0 : index
    %44 = vector.load %arg3[%c0_13, %c0_14] : memref<1x128xf32, #tpu.memory_space<vmem>>, vector<1x128xf32>
    tpu.vector_store %arg3[%c0_13, %c0_14], %43 {strides = array<i32>} : memref<1x128xf32, #tpu.memory_space<vmem>>, vector<1x128xf32>,
    return
  }
  func.func @transform_0(%arg0: i32) -> (i32, i32) {
    %c0_i32 = arith.constant 0 : i32
    %c0_i32_0 = arith.constant 0 : i32
    return %arg0, %c0_i32 : i32, i32
  }
  func.func @transform_1(%arg0: i32) -> (i32, i32) {
    %c0_i32 = arith.constant 0 : i32
    %c0_i32_0 = arith.constant 0 : i32
    return %arg0, %c0_i32 : i32, i32
  }
  func.func @transform_2(%arg0: i32) -> (i32, i32) {
    %c0_i32 = arith.constant 0 : i32
    %c0_i32_0 = arith.constant 0 : i32
    return %arg0, %c0_i32 : i32, i32
  }
}

</mosaic_0001>

<bundles_post_ra>
// kernel: tpu_custom_call.1
= control target key start
LH: loop header
LB: loop body
LE: loop exit
PB: predicated region body
PF: predicated region fallthrough
CT: control target
= control target key end

     0   :  { %vm14_vm0 = vcmask 261120   ;;  %s146_s0 = inlined_call_operand.vmem [shape: f32[8,32], index: 0, kind: input, shape index: {}]   ;;  %s147_s1 = inlined_call_operand.vmem [shape: s32[8,1], index: 1, kind: input, shape index: {}]   ;;  %s148_s2 = inlined_call_operand.hbm [shape: f32[1,128], index: 2, kind: output, shape index: {}]  }
   0x1   :  { %v12_v0 = vld [vmem:[%s146_s0] sm:$0xff] }
   0x2   :  { %7 = vsyncpa [#allocation3], 0  ;;  %v15_v1 = vsel %vm14_vm0, %v12_v0, -inf  ;;  %v116_v2 = vmov 0   ;;  %v13_v3 = vld [vmem:[%s147_s1] sm:$0xff]  ;;  %v26_v10 = vlaneseq  ;;  %vm50_vm2 = vcmask 7168  }
   0x3   :  { %85 = vset.pattern.permute.xlu0 %v116_v2  ;;  %s117_s0 = smov [#allocation2]   ;;  %s72_s15 = sshll.u32 %s148_s2, 4  ;;  %s73_s15 = int_to_ptr.hbm [resolvable:$true] %s72_s15 }
   0x4   :  { %16 = vmax.xlane.f32.xlu0 %v15_v1  ;;  %v27_v11 = vand.u32 127, %v26_v10  ;;  %s70_s1 = sshll.u32 %s117_s0, 4  ;;  %s71_s1 = int_to_ptr.vmem [resolvable:$true] %s70_s1 }
   0x6   :  { %vm61_vm3 = vcmp.eq.s32.totalorder %v27_v11, 0 }
  0x18   :  { %29 = vperm.xlu0 %85, %v13_v3  }
  0x77   :  { %v17_v4 = vpop.xlane.xlu0 %16 }
  0x78   :  { %v18_v5 = vsub.f32 %v12_v0, %v17_v4 }
  0x7a   :  { %v19_v6 = vmul.f32 1.442695, %v18_v5  ;;  %v36_v7 = vsel %vm14_vm0, %v18_v5, 0.0 }
  0x7b   :  { %37 = vadd.xlane.f32.xlu2 %v36_v7 }
  0x7c   :  { %86 = vpow2.f32 %v19_v6 }
  0x82   :  { %v87_v8 = vpop.eup %86 }
  0x83   :  { %v21_v9 = vsel %vm14_vm0, %v87_v8, 0.0 }
  0x84   :  { %22 = vadd.xlane.f32.xlu1 %v21_v9 }
  0x8a   :  { %v30_v12 = vpop.permute.xlu0 %29 }
  0x8b   :  { %vm31_vm1 = vcmp.eq.s32.totalorder %v27_v11, %v30_v12 }
  0x8c   :  { %v32_v13 = vsel %vm31_vm1, %v18_v5, 0.0 }
  0x8d   :  { %v33_v14 = vsel %vm14_vm0, %v32_v13, 0.0 }
  0x8e   :  { %34 = vadd.xlane.f32.xlu1 %v33_v14 }
  0xee   :  { %v38_v17 = vpop.xlane.xlu2 %37 }
  0xef   :  { %v41_v21 = vmul.f32 0.003125, %v38_v17 }
  0xf7   :  { %v23_v15 = vpop.xlane.xlu1 %22 }
  0xf8   :  { %88 = vlog2.f32 %v23_v15 }
  0xfe   :  { %v89_v16 = vpop.eup %88 }
  0xff   :  { %v25_v19 = vmul.f32 0.6931472, %v89_v16 }
 0x101   :  { %v35_v18 = vpop.xlane.xlu1 %34 }
 0x102   :  { %v39_v20 = vmul.f32 0.9, %v35_v18 }
 0x104   :  { %v40_v22 = vsub.f32 %v25_v19, %v39_v20 }
 0x106   :  { %v42_v23 = vsub.f32 %v40_v22, %v41_v21 }
 0x108   :  { %v51_v24 = vsel %vm50_vm2, %v42_v23, 0.0 }
 0x109   :  { %52 = vadd.xlane.f32.xlu2 %v51_v24 }
 0x17c   :  { %v53_v25 = vpop.xlane.xlu2 %52 }
 0x17d   :  { %v54_v26 = vrot.slane %v53_v25, 4 }
 0x17f   :  { %v55_v27 = vadd.f32 %v54_v26, %v53_v25 }
 0x181   :  { %v56_v28 = vrot.slane %v55_v27, 2 }
 0x183   :  { %v57_v29 = vadd.f32 %v56_v28, %v55_v27 }
 0x185   :  { %v58_v30 = vrot.slane %v57_v29, 1 }
 0x187   :  { %v59_v31 = vadd.f32 %v58_v30, %v57_v29 }
 0x189   :  { %81 = vpush %v59_v31 }
 0x1ba   :  { %s82_s16 = spop %81 }
 0x1bb   :  { %v62_v32 = vstv %s82_s16 }
 0x1bc   :  { %v63_v33 = vsel %vm61_vm3, %v62_v32, 0.0 }
 0x1bd   :  { %64 = vst [vmem:[#allocation2] sm:$0x1] %v63_v33 }
 0x1be   :  { %75 = dma.vmem_to_hbm [thread:$0]  %s71_s1, 16, %s73_s15, [#allocation3]  }
 0x1bf   :  { %114 = dma.done.wait [#allocation3], 16  }
 0x1c0   :  { %115 = vsyncadd [#allocation3], 4294967280 }
 0x1c1   :  { %80 = vsyncpa [#allocation3], 1 }

</bundles_post_ra>
